<compile_context>
chip_gen: v6e
topology: v6e:2x2x1
jax: 0.10.0
libtpu: 0.0.40
codegen_flags: <defaults>
</compile_context>

<pallas_src>
import functools

import jax
import jax.numpy as jnp
from jax.experimental import pallas as pl
from jax.experimental.pallas import tpu as pltpu

LANE = 128

# weight-slab tile indices
_C_TILE, _M_TILE, _KV_TILE, _O_TILE = 0, 1, 2, 3
# bias-slab row indices
_BQ, _BK, _BV, _BO, _BG, _LN_G, _LN_B = 0, 1, 2, 3, 4, 5, 6


def maf_kernel(main_ref, ctx_ref, w_ref, b_ref, out_ref, *, d, stabilize):
    bb, S, Dp = main_ref.shape
    N = bb * S
    two_d = 2 * d

    m2 = main_ref[...].reshape(N, Dp)            # f32, real data in lanes [0:d]
    c2 = ctx_ref[...].reshape(N, Dp)
    m2b = m2.astype(jnp.bfloat16)                # bf16 copies feed the MXU
    c2b = c2.astype(jnp.bfloat16)

    b = b_ref[...]                               # (8, Dp) f32
    bq = b[_BQ:_BQ + 1]
    bk = b[_BK:_BK + 1]
    bv = b[_BV:_BV + 1]                          # placed at lanes [d:2d]
    bo = b[_BO:_BO + 1]
    bg = b[_BG:_BG + 1]                          # bg + bo @ wg1 (pre-folded)
    ln_g = b[_LN_G:_LN_G + 1]
    ln_b = b[_LN_B:_LN_B + 1]

    lane = jax.lax.broadcasted_iota(jnp.int32, (N, Dp), 1)
    in01 = lane < d                              # lane group [0:d]
    in12 = (lane >= d) & (lane < two_d)          # lane group [d:2d]

    # ---- packed projections (bf16 x bf16 -> f32 accumulate) ---------------
    # c_pack cols: [key_ctx | val_ctx | lam_k ctx-term | lam_v ctx-term]
    c_pack = jnp.dot(c2b, w_ref[_C_TILE], preferred_element_type=jnp.float32)
    # m_pack cols: [q (scale folded) | gate main-term | lam_k main | lam_v main]
    m_pack = jnp.dot(m2b, w_ref[_M_TILE], preferred_element_type=jnp.float32)

    # ---- ContextAwareAttention lambda gates --------------------------------
    lam_pre = m_pack + c_pack
    lam_k = jax.nn.sigmoid(lam_pre[:, two_d:two_d + 1])          # (N, 1)
    lam_v = jax.nn.sigmoid(lam_pre[:, two_d + 1:two_d + 2])      # (N, 1)

    # Build [k_cap | v_cap] lane-packed: main duplicated into lanes [d:2d],
    # then a lane-grouped lerp towards [key_ctx | val_ctx]. Lanes >= 2d end up
    # exactly zero (lam_map and m_dup are zero there).
    m_dup = m2 + pltpu.roll(m2, d, axis=1)
    lam_map = jnp.where(in01, lam_k, 0.0) + jnp.where(in12, lam_v, 0.0)
    kv_in = m_dup + lam_map * (c_pack - m_dup)

    # kv_pack cols: [k_cap @ wk | v_cap @ wv] (block-diagonal tile)
    kv_pack = jnp.dot(kv_in.astype(jnp.bfloat16), w_ref[_KV_TILE],
                      preferred_element_type=jnp.float32)

    # ---- single-head nn.MultiheadAttention (dropout inactive at eval) ------
    q_p = jnp.where(in01, m_pack, 0.0) + bq       # lanes [0:d]
    k_p = jnp.where(in01, kv_pack, 0.0) + bk      # lanes [0:d]
    v_p = jnp.where(in12, kv_pack, 0.0) + bv      # lanes [d:2d]

    q3 = q_p.reshape(bb, S, Dp)
    k3 = k_p.reshape(bb, S, Dp)
    v3 = v_p.reshape(bb, S, Dp)
    s = jnp.einsum('bqd,bkd->bqk', q3, k3, preferred_element_type=jnp.float32)
    if stabilize:
        s = s - jnp.max(s, axis=-1, keepdims=True)
    p = jnp.exp(s)
    p = p * pl.reciprocal(jnp.sum(p, axis=-1, keepdims=True), approx=True)
    attn = jnp.einsum('bqk,bkd->bqd', p, v3,
                      preferred_element_type=jnp.float32)   # lanes [d:2d]

    # o_pack cols: [attn @ wo | attn @ (wo @ wg1)]
    o_pack = jnp.dot(attn.reshape(N, Dp).astype(jnp.bfloat16), w_ref[_O_TILE],
                     preferred_element_type=jnp.float32)
    mixed = jnp.where(in01, o_pack, 0.0) + bo     # lanes [0:d], rest exactly 0

    # ---- gate + residual + LayerNorm ----------------------------------------
    # Gate terms live in lanes [d:2d] of (o_pack + m_pack); rotate them down to
    # lanes [0:d]. Lanes >= d of gate hold finite junk but multiply mixed == 0.
    gate_pre = pltpu.roll(o_pack + m_pack, Dp - d, axis=1) + bg
    gate = jax.nn.sigmoid(gate_pre)
    pre = gate * mixed + m2                       # padded lanes are exactly zero

    inv_d = 1.0 / float(d)
    mu = jnp.sum(pre, axis=-1, keepdims=True) * inv_d
    ex2 = jnp.sum(pre * pre, axis=-1, keepdims=True) * inv_d
    var = ex2 - mu * mu
    normed = (pre - mu) * jax.lax.rsqrt(var + 1e-5)
    out_ref[...] = (normed * ln_g + ln_b).reshape(bb, S, Dp)


def _dual_tensorcore() -> bool:
    """True only where a 'parallel' grid axis can use a second TensorCore (v7x)."""
    try:
        kind = jax.devices()[0].device_kind.lower()
    except Exception:
        return False
    return ("v7" in kind) or ("7x" in kind)


def pack_params(params, d, dp):
    """Fold + pack the 19 raw parameters into 4 bf16 weight tiles and an f32 bias slab."""
    (u_k_t, u_v_t, w1_k, w2_k, w1_v, w2_v,
     wq_t, wk_t, wv_t, bq, bk, bv,
     wo_t, bo, wg1_t, wg2_t, bg, ln_g, ln_b) = params
    assert dp >= 2 * d + 2, "packed tiles need 2*D+2 output columns"
    scale = 1.0 / (float(d) ** 0.5)

    # lam context columns: sum(key_ctx*w2_k) == context @ (u_k_t @ w2_k.T)
    v2_k = u_k_t @ w2_k.T                         # (d, 1)
    v2_v = u_v_t @ w2_v.T                         # (d, 1)

    def tile():
        return jnp.zeros((dp, dp), jnp.float32)

    # C tile (applied to context): key_ctx | val_ctx | lam ctx-cols
    c_tile = tile().at[:d, :d].set(u_k_t).at[:d, d:2 * d].set(u_v_t)
    c_tile = c_tile.at[:d, 2 * d:2 * d + 1].set(v2_k)
    c_tile = c_tile.at[:d, 2 * d + 1:2 * d + 2].set(v2_v)

    # M tile (applied to main): q (1/sqrt(D) folded) | gate main-term | lam main-cols
    m_tile = tile().at[:d, :d].set(wq_t * scale).at[:d, d:2 * d].set(wg2_t)
    m_tile = m_tile.at[:d, 2 * d:2 * d + 1].set(w1_k.T)
    m_tile = m_tile.at[:d, 2 * d + 1:2 * d + 2].set(w1_v.T)

    # KV tile (block-diagonal, applied to lane-packed [k_cap | v_cap])
    kv_tile = tile().at[:d, :d].set(wk_t).at[d:2 * d, d:2 * d].set(wv_t)

    # O tile (applied to attn, which lives in lanes [d:2d]):
    #   cols [0:d]  -> mixed pre-bias (wo)
    #   cols [d:2d] -> gate mixed-term (wo @ wg1, pre-composed)
    o_tile = tile().at[d:2 * d, :d].set(wo_t)
    o_tile = o_tile.at[d:2 * d, d:2 * d].set(wo_t @ wg1_t)

    w_slab = jnp.stack([c_tile, m_tile, kv_tile, o_tile]).astype(jnp.bfloat16)

    def row(v, start):
        r = jnp.zeros((1, dp), jnp.float32)
        return r.at[:, start:start + d].set(v)

    bg_eff = bg + bo @ wg1_t                      # fold bo through the composed gate
    b_slab = jnp.concatenate([
        row(bq * scale, 0),                       # 0: bq (scale folded)
        row(bk, 0),                               # 1: bk
        row(bv, d),                               # 2: bv, placed at lanes [d:2d]
        row(bo, 0),                               # 3: bo
        row(bg_eff, 0),                           # 4: bg + bo @ wg1
        row(ln_g, 0),                             # 5: LayerNorm gamma
        row(ln_b, 0),                             # 6: LayerNorm beta
        jnp.zeros((1, dp), jnp.float32),          # 7: pad row
    ], axis=0)
    return w_slab, b_slab


def maf_forward(main, context, params, *, stabilize_softmax=False):
    B, S, D = main.shape
    # Full-128 lane padding -> every vector load/store (incl. output) unmasked;
    # the packed tiles also need 2*D+2 output columns.
    dp = ((max(2 * D + 2, LANE) + LANE - 1) // LANE) * LANE
    w_slab, b_slab = pack_params(params, D, dp)
    main_p = jnp.pad(main, ((0, 0), (0, 0), (0, dp - D)))
    ctx_p = jnp.pad(context, ((0, 0), (0, 0), (0, dp - D)))

    # Generation-aware grid: one serial step (all rows) on single-TC v5e/v6e;
    # 2-way "parallel" batch split only where a second TensorCore exists (v7x),
    # where the ~128 KiB bf16 slab makes per-core duplication cheap.
    grid_b = 2 if (_dual_tensorcore() and B >= 2 and B % 2 == 0) else 1
    bb = B // grid_b

    act_spec = pl.BlockSpec((bb, S, dp), lambda b: (b, 0, 0))
    # NOTE: weight/bias index_maps are grid-constant; with one step per core the
    # slabs are DMA'd exactly once per core and total VMEM use is <1 MiB, so an
    # explicit single-buffer pipeline_mode would buy nothing here.
    out = pl.pallas_call(
        functools.partial(maf_kernel, d=D, stabilize=stabilize_softmax),
        out_shape=jax.ShapeDtypeStruct((B, S, dp), jnp.float32),
        grid_spec=pltpu.PrefetchScalarGridSpec(
            num_scalar_prefetch=0,
            grid=(grid_b,),
            in_specs=[act_spec,
                      act_spec,
                      pl.BlockSpec((4, dp, dp), lambda b: (0, 0, 0)),
                      pl.BlockSpec((8, dp), lambda b: (0, 0))],
            out_specs=act_spec,
        ),
        compiler_params=pltpu.CompilerParams(
            dimension_semantics=("parallel",)),
    )(main_p, ctx_p, w_slab, b_slab)
    return out[:, :, :D]


def maf_reference(main, context, params):
    """Pure-JAX reference mirroring the PyTorch forward (raw pre-transposed params)."""
    (u_k_t, u_v_t, w1_k, w2_k, w1_v, w2_v,
     wq_t, wk_t, wv_t, bq, bk, bv,
     wo_t, bo, wg1_t, wg2_t, bg, ln_g, ln_b) = params
    D = main.shape[-1]
    key_ctx = context @ u_k_t
    val_ctx = context @ u_v_t
    lam_k = jax.nn.sigmoid(jnp.sum(main * w1_k, -1, keepdims=True)
                           + jnp.sum(key_ctx * w2_k, -1, keepdims=True))
    lam_v = jax.nn.sigmoid(jnp.sum(main * w1_v, -1, keepdims=True)
                           + jnp.sum(val_ctx * w2_v, -1, keepdims=True))
    k_cap = (1 - lam_k) * main + lam_k * key_ctx
    v_cap = (1 - lam_v) * main + lam_v * val_ctx
    q_p = main @ wq_t + bq
    k_p = k_cap @ wk_t + bk
    v_p = v_cap @ wv_t + bv
    s = jnp.einsum("bqd,bkd->bqk", q_p, k_p) / (float(D) ** 0.5)
    p = jax.nn.softmax(s, axis=-1)
    mixed = jnp.einsum("bqk,bkd->bqd", p, v_p) @ wo_t + bo
    gate = jax.nn.sigmoid(mixed @ wg1_t + main @ wg2_t + bg)
    pre = gate * mixed + main
    mu = jnp.mean(pre, -1, keepdims=True)
    var = jnp.mean((pre - mu) ** 2, -1, keepdims=True)
    return (pre - mu) * jax.lax.rsqrt(var + 1e-5) * ln_g + ln_b


def init_params(key, D):
    ks = jax.random.split(key, 16)
    n = lambda k, shape: (0.02 * jax.random.normal(k, shape)).astype(jnp.float32)
    # ContextAwareAttention projections (pre-transposed where 2-D)
    u_k_t = n(ks[0], (D, D))
    u_v_t = n(ks[1], (D, D))
    w1_k = n(ks[2], (1, D))
    w2_k = n(ks[3], (1, D))
    w1_v = n(ks[4], (1, D))
    w2_v = n(ks[5], (1, D))
    # nn.MultiheadAttention(num_heads=1): in_proj (3D, D) split into q/k/v, out_proj (D, D)
    wq_t = n(ks[6], (D, D))
    wk_t = n(ks[7], (D, D))
    wv_t = n(ks[8], (D, D))
    bq = n(ks[9], (1, D))
    bk = n(ks[10], (1, D))
    bv = n(ks[11], (1, D))
    wo_t = n(ks[12], (D, D))
    bo = n(ks[13], (1, D))
    # gate: Linear(2D, D) -> split weight for the concat: Wg[:, :D].T and Wg[:, D:].T
    wg1_t = n(ks[14], (D, D))
    wg2_t = n(ks[15], (D, D))
    bg = jnp.zeros((1, D), jnp.float32)
    # LayerNorm(D)
    ln_g = jnp.ones((1, D), jnp.float32)
    ln_b = jnp.zeros((1, D), jnp.float32)
    return [u_k_t, u_v_t, w1_k, w2_k, w1_v, w2_v,
            wq_t, wk_t, wv_t, bq, bk, bv,
            wo_t, bo, wg1_t, wg2_t, bg, ln_g, ln_b]


if __name__ == "__main__":
    B, S, D = 2, 8, 32   # batch, sequence length, dim_model
    key = jax.random.PRNGKey(0)
    k_main, k_ctx, k_par = jax.random.split(key, 3)
    main_input = jax.random.normal(k_main, (B, S, D), jnp.float32)
    context_input = jax.random.normal(k_ctx, (B, S, D), jnp.float32)
    params = init_params(k_par, D)

    out = maf_forward(main_input, context_input, params)
    out = jax.block_until_ready(out)

    ref = maf_reference(main_input, context_input, params)
    assert out.shape == (B, S, D)
    assert jnp.allclose(out, ref, rtol=1e-2, atol=1e-2), "mismatch vs JAX reference"
    print("KERNEL_OK")
</pallas_src>

<mosaic_0001>
module attributes {stable_mosaic.version = 11 : i64} {
  func.func @maf_kernel(%arg0: i32, %arg1: memref<2x8x128xf32, #tpu.memory_space<vmem>>, %arg2: memref<2x8x128xf32, #tpu.memory_space<vmem>>, %arg3: memref<4x128x128xbf16, #tpu.memory_space<vmem>>, %arg4: memref<8x128xf32, #tpu.memory_space<vmem>>, %arg5: memref<2x8x128xf32, #tpu.memory_space<vmem>>) attributes {dimension_semantics = [#tpu.dimension_semantics<parallel>], iteration_bounds = array<i64: 1>, scalar_prefetch = 0 : i64, scratch_operands = 0 : i64, tpu.core_type = #tpu.core_type<tc>, window_params = [{transform_indices = @transform_0, window_bounds = array<i64: 2, 8, 128>}, {transform_indices = @transform_1, window_bounds = array<i64: 2, 8, 128>}, {pipeline_mode = #tpu.pipeline_mode<synchronous>, transform_indices = @transform_2, window_bounds = array<i64: 4, 128, 128>}, {pipeline_mode = #tpu.pipeline_mode<synchronous>, transform_indices = @transform_3, window_bounds = array<i64: 8, 128>}, {transform_indices = @transform_4, window_bounds = array<i64: 2, 8, 128>}]} {
    %c0 = arith.constant 0 : index
    %c0_0 = arith.constant 0 : index
    %c0_1 = arith.constant 0 : index
    %0 = vector.load %arg1[%c0, %c0_0, %c0_1] : memref<2x8x128xf32, #tpu.memory_space<vmem>>, vector<2x8x128xf32>
    %1 = vector.shape_cast %0 : vector<2x8x128xf32> to vector<16x128xf32>
    %c0_2 = arith.constant 0 : index
    %c0_3 = arith.constant 0 : index
    %c0_4 = arith.constant 0 : index
    %2 = vector.load %arg2[%c0_2, %c0_3, %c0_4] : memref<2x8x128xf32, #tpu.memory_space<vmem>>, vector<2x8x128xf32>
    %3 = vector.shape_cast %2 : vector<2x8x128xf32> to vector<16x128xf32>
    %4 = arith.truncf %1 : vector<16x128xf32> to vector<16x128xbf16>
    %5 = arith.truncf %3 : vector<16x128xf32> to vector<16x128xbf16>
    %c0_5 = arith.constant 0 : index
    %c0_6 = arith.constant 0 : index
    %6 = vector.load %arg4[%c0_5, %c0_6] : memref<8x128xf32, #tpu.memory_space<vmem>>, vector<8x128xf32>
    %7 = vector.extract_strided_slice %6 {offsets = [0, 0], sizes = [1, 128], strides = [1, 1]} : vector<8x128xf32> to vector<1x128xf32>
    %8 = vector.extract_strided_slice %6 {offsets = [1, 0], sizes = [1, 128], strides = [1, 1]} : vector<8x128xf32> to vector<1x128xf32>
    %9 = vector.extract_strided_slice %6 {offsets = [2, 0], sizes = [1, 128], strides = [1, 1]} : vector<8x128xf32> to vector<1x128xf32>
    %10 = vector.extract_strided_slice %6 {offsets = [3, 0], sizes = [1, 128], strides = [1, 1]} : vector<8x128xf32> to vector<1x128xf32>
    %11 = vector.extract_strided_slice %6 {offsets = [4, 0], sizes = [1, 128], strides = [1, 1]} : vector<8x128xf32> to vector<1x128xf32>
    %12 = vector.extract_strided_slice %6 {offsets = [5, 0], sizes = [1, 128], strides = [1, 1]} : vector<8x128xf32> to vector<1x128xf32>
    %13 = vector.extract_strided_slice %6 {offsets = [6, 0], sizes = [1, 128], strides = [1, 1]} : vector<8x128xf32> to vector<1x128xf32>
    %14 = tpu.iota {dimensions = array<i32: 1>} : vector<16x128xi32>
    %c32_i32 = arith.constant 32 : i32
    %15 = vector.broadcast %c32_i32 : i32 to vector<16x128xi32>
    %16 = arith.cmpi slt, %14, %15 : vector<16x128xi32>
    %c32_i32_7 = arith.constant 32 : i32
    %17 = vector.broadcast %c32_i32_7 : i32 to vector<16x128xi32>
    %18 = arith.cmpi sge, %14, %17 : vector<16x128xi32>
    %c64_i32 = arith.constant 64 : i32
    %19 = vector.broadcast %c64_i32 : i32 to vector<16x128xi32>
    %20 = arith.cmpi slt, %14, %19 : vector<16x128xi32>
    %21 = arith.andi %18, %20 : vector<16x128xi1>
    %c0_8 = arith.constant 0 : index
    %c0_9 = arith.constant 0 : index
    %c0_10 = arith.constant 0 : index
    %22 = vector.load %arg3[%c0_8, %c0_9, %c0_10] : memref<4x128x128xbf16, #tpu.memory_space<vmem>>, vector<1x128x128xbf16>
    %23 = vector.shape_cast %22 : vector<1x128x128xbf16> to vector<128x128xbf16>
    %cst = arith.constant dense<0.000000e+00> : vector<16x128xf32>
    %24 = tpu.matmul %5, %23, %cst {dimension_numbers = #tpu.dot_dimension_numbers<[1], [0], [0], [1], [0, 0, 1, 1], [], []>} : vector<16x128xbf16>, vector<128x128xbf16>, vector<16x128xf32> -> vector<16x128xf32>
    %c1 = arith.constant 1 : index
    %c0_11 = arith.constant 0 : index
    %c0_12 = arith.constant 0 : index
    %25 = vector.load %arg3[%c1, %c0_11, %c0_12] : memref<4x128x128xbf16, #tpu.memory_space<vmem>>, vector<1x128x128xbf16>
    %26 = vector.shape_cast %25 : vector<1x128x128xbf16> to vector<128x128xbf16>
    %cst_13 = arith.constant dense<0.000000e+00> : vector<16x128xf32>
    %27 = tpu.matmul %4, %26, %cst_13 {dimension_numbers = #tpu.dot_dimension_numbers<[1], [0], [0], [1], [0, 0, 1, 1], [], []>} : vector<16x128xbf16>, vector<128x128xbf16>, vector<16x128xf32> -> vector<16x128xf32>
    %28 = arith.addf %27, %24 : vector<16x128xf32>
    %29 = vector.extract_strided_slice %28 {offsets = [0, 64], sizes = [16, 1], strides = [1, 1]} : vector<16x128xf32> to vector<16x1xf32>
    %30 = arith.negf %29 : vector<16x1xf32>
    %31 = math.exp %30 : vector<16x1xf32>
    %cst_14 = arith.constant 1.000000e+00 : f32
    %32 = vector.broadcast %cst_14 : f32 to vector<16x1xf32>
    %33 = arith.addf %32, %31 : vector<16x1xf32>
    %34 = arith.divf %32, %33 : vector<16x1xf32>
    %35 = vector.extract_strided_slice %28 {offsets = [0, 65], sizes = [16, 1], strides = [1, 1]} : vector<16x128xf32> to vector<16x1xf32>
    %36 = arith.negf %35 : vector<16x1xf32>
    %37 = math.exp %36 : vector<16x1xf32>
    %cst_15 = arith.constant 1.000000e+00 : f32
    %38 = vector.broadcast %cst_15 : f32 to vector<16x1xf32>
    %39 = arith.addf %38, %37 : vector<16x1xf32>
    %40 = arith.divf %38, %39 : vector<16x1xf32>
    %c32_i32_16 = arith.constant 32 : i32
    %41 = tpu.dynamic_rotate %1 by %c32_i32_16 dim 1 : vector<16x128xf32>, i32 -> vector<16x128xf32>
    %42 = arith.addf %1, %41 : vector<16x128xf32>
    %cst_17 = arith.constant 0.000000e+00 : f32
    %43 = vector.shape_cast %34 : vector<16x1xf32> to vector<16x1xf32>
    %44 = vector.broadcast %43 : vector<16x1xf32> to vector<16x128xf32>
    %45 = vector.broadcast %cst_17 : f32 to vector<16x128xf32>
    %46 = arith.select %16, %44, %45 : vector<16x128xi1>, vector<16x128xf32>
    %cst_18 = arith.constant 0.000000e+00 : f32
    %47 = vector.shape_cast %40 : vector<16x1xf32> to vector<16x1xf32>
    %48 = vector.broadcast %47 : vector<16x1xf32> to vector<16x128xf32>
    %49 = vector.broadcast %cst_18 : f32 to vector<16x128xf32>
    %50 = arith.select %21, %48, %49 : vector<16x128xi1>, vector<16x128xf32>
    %51 = arith.addf %46, %50 : vector<16x128xf32>
    %52 = arith.subf %24, %42 : vector<16x128xf32>
    %53 = arith.mulf %51, %52 : vector<16x128xf32>
    %54 = arith.addf %42, %53 : vector<16x128xf32>
    %55 = arith.truncf %54 : vector<16x128xf32> to vector<16x128xbf16>
    %c2 = arith.constant 2 : index
    %c0_19 = arith.constant 0 : index
    %c0_20 = arith.constant 0 : index
    %56 = vector.load %arg3[%c2, %c0_19, %c0_20] : memref<4x128x128xbf16, #tpu.memory_space<vmem>>, vector<1x128x128xbf16>
    %57 = vector.shape_cast %56 : vector<1x128x128xbf16> to vector<128x128xbf16>
    %cst_21 = arith.constant dense<0.000000e+00> : vector<16x128xf32>
    %58 = tpu.matmul %55, %57, %cst_21 {dimension_numbers = #tpu.dot_dimension_numbers<[1], [0], [0], [1], [0, 0, 1, 1], [], []>} : vector<16x128xbf16>, vector<128x128xbf16>, vector<16x128xf32> -> vector<16x128xf32>
    %cst_22 = arith.constant 0.000000e+00 : f32
    %59 = vector.broadcast %cst_22 : f32 to vector<16x128xf32>
    %60 = arith.select %16, %27, %59 : vector<16x128xi1>, vector<16x128xf32>
    %61 = vector.broadcast %7 : vector<1x128xf32> to vector<16x128xf32>
    %62 = arith.addf %60, %61 : vector<16x128xf32>
    %cst_23 = arith.constant 0.000000e+00 : f32
    %63 = vector.broadcast %cst_23 : f32 to vector<16x128xf32>
    %64 = arith.select %16, %58, %63 : vector<16x128xi1>, vector<16x128xf32>
    %65 = vector.broadcast %8 : vector<1x128xf32> to vector<16x128xf32>
    %66 = arith.addf %64, %65 : vector<16x128xf32>
    %cst_24 = arith.constant 0.000000e+00 : f32
    %67 = vector.broadcast %cst_24 : f32 to vector<16x128xf32>
    %68 = arith.select %21, %58, %67 : vector<16x128xi1>, vector<16x128xf32>
    %69 = vector.broadcast %9 : vector<1x128xf32> to vector<16x128xf32>
    %70 = arith.addf %68, %69 : vector<16x128xf32>
    %71 = vector.shape_cast %62 : vector<16x128xf32> to vector<2x8x128xf32>
    %72 = vector.shape_cast %66 : vector<16x128xf32> to vector<2x8x128xf32>
    %73 = vector.shape_cast %70 : vector<16x128xf32> to vector<2x8x128xf32>
    "tpu.trace_start"() <{level = 10 : i32, message = "bqd,bkd->bqk"}> : () -> ()
    %cst_25 = arith.constant dense<0.000000e+00> : vector<2x8x8xf32>
    %74 = tpu.matmul %71, %72, %cst_25 {dimension_numbers = #tpu.dot_dimension_numbers<[2], [2], [1], [1], [0, 0, 0, 1, 1, 1], [0], [0]>} : vector<2x8x128xf32>, vector<2x8x128xf32>, vector<2x8x8xf32> -> vector<2x8x8xf32>
    "tpu.trace_stop"() : () -> ()
    %75 = math.exp %74 : vector<2x8x8xf32>
    %cst_26 = arith.constant dense<0.000000e+00> : vector<2x8xf32>
    %76 = vector.multi_reduction <add>, %75, %cst_26 [2] : vector<2x8x8xf32> to vector<2x8xf32>
    %77 = vector.shape_cast %76 : vector<2x8xf32> to vector<2x8x1xf32>
    %78 = tpu.reciprocal %77 {approx = true} : vector<2x8x1xf32> -> vector<2x8x1xf32>
    %79 = vector.broadcast %78 : vector<2x8x1xf32> to vector<2x8x8xf32>
    %80 = arith.mulf %75, %79 : vector<2x8x8xf32>
    "tpu.trace_start"() <{level = 10 : i32, message = "bqk,bkd->bqd"}> : () -> ()
    %cst_27 = arith.constant dense<0.000000e+00> : vector<2x8x128xf32>
    %81 = tpu.matmul %80, %73, %cst_27 {dimension_numbers = #tpu.dot_dimension_numbers<[2], [1], [1], [2], [0, 0, 0, 1, 1, 2], [0], [0]>} : vector<2x8x8xf32>, vector<2x8x128xf32>, vector<2x8x128xf32> -> vector<2x8x128xf32>
    "tpu.trace_stop"() : () -> ()
    %82 = vector.shape_cast %81 : vector<2x8x128xf32> to vector<16x128xf32>
    %83 = arith.truncf %82 : vector<16x128xf32> to vector<16x128xbf16>
    %c3 = arith.constant 3 : index
    %c0_28 = arith.constant 0 : index
    %c0_29 = arith.constant 0 : index
    %84 = vector.load %arg3[%c3, %c0_28, %c0_29] : memref<4x128x128xbf16, #tpu.memory_space<vmem>>, vector<1x128x128xbf16>
    %85 = vector.shape_cast %84 : vector<1x128x128xbf16> to vector<128x128xbf16>
    %cst_30 = arith.constant dense<0.000000e+00> : vector<16x128xf32>
    %86 = tpu.matmul %83, %85, %cst_30 {dimension_numbers = #tpu.dot_dimension_numbers<[1], [0], [0], [1], [0, 0, 1, 1], [], []>} : vector<16x128xbf16>, vector<128x128xbf16>, vector<16x128xf32> -> vector<16x128xf32>
    %cst_31 = arith.constant 0.000000e+00 : f32
    %87 = vector.broadcast %cst_31 : f32 to vector<16x128xf32>
    %88 = arith.select %16, %86, %87 : vector<16x128xi1>, vector<16x128xf32>
    %89 = vector.broadcast %10 : vector<1x128xf32> to vector<16x128xf32>
    %90 = arith.addf %88, %89 : vector<16x128xf32>
    %91 = arith.addf %86, %27 : vector<16x128xf32>
    %c96_i32 = arith.constant 96 : i32
    %92 = tpu.dynamic_rotate %91 by %c96_i32 dim 1 : vector<16x128xf32>, i32 -> vector<16x128xf32>
    %93 = vector.broadcast %11 : vector<1x128xf32> to vector<16x128xf32>
    %94 = arith.addf %92, %93 : vector<16x128xf32>
    %95 = arith.negf %94 : vector<16x128xf32>
    %96 = math.exp %95 : vector<16x128xf32>
    %cst_32 = arith.constant 1.000000e+00 : f32
    %97 = vector.broadcast %cst_32 : f32 to vector<16x128xf32>
    %98 = arith.addf %97, %96 : vector<16x128xf32>
    %99 = arith.divf %97, %98 : vector<16x128xf32>
    %100 = arith.mulf %99, %90 : vector<16x128xf32>
    %101 = arith.addf %100, %1 : vector<16x128xf32>
    %cst_33 = arith.constant dense<0.000000e+00> : vector<16xf32>
    %102 = vector.multi_reduction <add>, %101, %cst_33 [1] : vector<16x128xf32> to vector<16xf32>
    %103 = vector.shape_cast %102 : vector<16xf32> to vector<16x1xf32>
    %cst_34 = arith.constant 3.125000e-02 : f32
    %104 = vector.broadcast %cst_34 : f32 to vector<16x1xf32>
    %105 = arith.mulf %103, %104 : vector<16x1xf32>
    %106 = arith.mulf %101, %101 : vector<16x128xf32>
    %cst_35 = arith.constant dense<0.000000e+00> : vector<16xf32>
    %107 = vector.multi_reduction <add>, %106, %cst_35 [1] : vector<16x128xf32> to vector<16xf32>
    %108 = vector.shape_cast %107 : vector<16xf32> to vector<16x1xf32>
    %cst_36 = arith.constant 3.125000e-02 : f32
    %109 = vector.broadcast %cst_36 : f32 to vector<16x1xf32>
    %110 = arith.mulf %108, %109 : vector<16x1xf32>
    %111 = arith.mulf %105, %105 : vector<16x1xf32>
    %112 = arith.subf %110, %111 : vector<16x1xf32>
    %113 = vector.broadcast %105 : vector<16x1xf32> to vector<16x128xf32>
    %114 = arith.subf %101, %113 : vector<16x128xf32>
    %cst_37 = arith.constant 9.99999974E-6 : f32
    %115 = vector.broadcast %cst_37 : f32 to vector<16x1xf32>
    %116 = arith.addf %112, %115 : vector<16x1xf32>
    %117 = math.rsqrt %116 : vector<16x1xf32>
    %118 = vector.broadcast %117 : vector<16x1xf32> to vector<16x128xf32>
    %119 = arith.mulf %114, %118 : vector<16x128xf32>
    %120 = vector.broadcast %12 : vector<1x128xf32> to vector<16x128xf32>
    %121 = arith.mulf %119, %120 : vector<16x128xf32>
    %122 = vector.broadcast %13 : vector<1x128xf32> to vector<16x128xf32>
    %123 = arith.addf %121, %122 : vector<16x128xf32>
    %124 = vector.shape_cast %123 : vector<16x128xf32> to vector<2x8x128xf32>
    %c0_38 = arith.constant 0 : index
    %c0_39 = arith.constant 0 : index
    %c0_40 = arith.constant 0 : index
    %125 = vector.load %arg5[%c0_38, %c0_39, %c0_40] : memref<2x8x128xf32, #tpu.memory_space<vmem>>, vector<2x8x128xf32>
    tpu.vector_store %arg5[%c0_38, %c0_39, %c0_40], %124 {strides = array<i32>} : memref<2x8x128xf32, #tpu.memory_space<vmem>>, vector<2x8x128xf32>,
    return
  }
  func.func @transform_0(%arg0: i32) -> (i32, i32, i32) {
    %c0_i32 = arith.constant 0 : i32
    %c0_i32_0 = arith.constant 0 : i32
    %c0_i32_1 = arith.constant 0 : i32
    return %arg0, %c0_i32, %c0_i32_0 : i32, i32, i32
  }
  func.func @transform_1(%arg0: i32) -> (i32, i32, i32) {
    %c0_i32 = arith.constant 0 : i32
    %c0_i32_0 = arith.constant 0 : i32
    %c0_i32_1 = arith.constant 0 : i32
    return %arg0, %c0_i32, %c0_i32_0 : i32, i32, i32
  }
  func.func @transform_2(%arg0: i32) -> (i32, i32, i32) {
    %c0_i32 = arith.constant 0 : i32
    %c0_i32_0 = arith.constant 0 : i32
    %c0_i32_1 = arith.constant 0 : i32
    %c0_i32_2 = arith.constant 0 : i32
    return %c0_i32, %c0_i32_0, %c0_i32_1 : i32, i32, i32
  }
  func.func @transform_3(%arg0: i32) -> (i32, i32) {
    %c0_i32 = arith.constant 0 : i32
    %c0_i32_0 = arith.constant 0 : i32
    %c0_i32_1 = arith.constant 0 : i32
    return %c0_i32, %c0_i32_0 : i32, i32
  }
  func.func @transform_4(%arg0: i32) -> (i32, i32, i32) {
    %c0_i32 = arith.constant 0 : i32
    %c0_i32_0 = arith.constant 0 : i32
    %c0_i32_1 = arith.constant 0 : i32
    return %arg0, %c0_i32, %c0_i32_0 : i32, i32, i32
  }
}

</mosaic_0001>

<bundles_post_ra>
// kernel: tpu_custom_call.1
= control target key start
LH: loop header
LB: loop body
LE: loop exit
PB: predicated region body
PF: predicated region fallthrough
CT: control target
= control target key end

     0   :  { %9 = vsyncpa [#allocation3], 0  ;;  %s1545_s0 = inlined_call_operand.hbm [shape: f32[2,8,128], index: 0, kind: input, shape index: {}]   ;;  %s1546_s1 = inlined_call_operand.hbm [shape: f32[2,8,128], index: 1, kind: input, shape index: {}]   ;;  %s1547_s2 = inlined_call_operand.hbm [shape: bf16[4,128,128], index: 2, kind: input, shape index: {}]   ;;  %s1548_s3 = inlined_call_operand.hbm [shape: f32[8,128], index: 3, kind: input, shape index: {}]   ;;  %s1549_s4 = inlined_call_operand.hbm [shape: f32[2,8,128], index: 4, kind: output, shape index: {}]  }
   0x1   :  { %10 = vsyncpa [#allocation6], 0 }
   0x2   :  { %11 = vsyncpa [#allocation9], 0 }
   0x3   :  { %12 = vsyncpa [#allocation4], 0  ;;  %s1348_s15 = smov [#allocation5]   ;;  %s1349_s17 = smov [#allocation2]  }
   0x4   :  { %s30_s16 = sshll.u32 %s1348_s15, 4  ;;  %s18_s18 = sshll.u32 %s1349_s17, 4  ;;  %s31_s16 = int_to_ptr.vmem [resolvable:$true] %s30_s16  ;;  %s19_s18 = int_to_ptr.vmem [resolvable:$true] %s18_s18 }
   0x5   :  { %s1248_s19 = scalar_lea.vmem %s31_s16, 256  ;;  %p1253_p1 = scmp.lt.s32.totalorder %s31_s16, %s31_s16 }
   0x6   :  { %p1249_p0 = scmp.ne.s32.totalorder %s31_s16, %s1248_s19  ;;  %p1254_p2 = scmp.lt.s32.totalorder %s1248_s19, %s1248_s19 }
   0x8   :  { %p1255_p3 = por %p1254_p2, %p1253_p1 }
   0xa   :  { %p1256_p4 = pnand %p1255_p3, %p1249_p0 }
   0xc   :  { %1259 = shalt.err (!%p1256_p4)
}
   0xd   :  { %s1350_s20 = smov 128   ;;  %s1351_s21 = smov 8  }
   0xe   :  { %36 = dma.hbm_to_vmem [thread:$0]  %s1546_s1, 256, %s31_s16, [#allocation6], %s1350_s20, %s1350_s20, %s1351_s21  }
   0xf   :  { %s1268_s24 = scalar_lea.vmem %s19_s18, 256  ;;  %p1273_p6 = scmp.lt.s32.totalorder %s19_s18, %s19_s18 }
  0x10   :  { %p1269_p5 = scmp.ne.s32.totalorder %s19_s18, %s1268_s24  ;;  %p1274_p7 = scmp.lt.s32.totalorder %s1268_s24, %s1268_s24 }
  0x12   :  { %p1275_p8 = por %p1274_p7, %p1273_p6 }
  0x14   :  { %p1276_p9 = pnand %p1275_p8, %p1269_p5 }
  0x16   :  { %1279 = shalt.err (!%p1276_p9)
}
  0x17   :  { %24 = dma.hbm_to_vmem [thread:$0]  %s1545_s0, 256, %s19_s18, [#allocation3], %s1350_s20, %s1350_s20, %s1351_s21  }
  0x18   :  { %s1352_s27 = smov [#allocation7]  }
  0x19   :  { %s42_s28 = sshll.u32 %s1352_s27, 4  ;;  %s43_s28 = int_to_ptr.vmem [resolvable:$true] %s42_s28 }
  0x1a   :  { %s1288_s29 = scalar_lea.vmem %s43_s28, 4096  ;;  %p1293_p11 = scmp.lt.s32.totalorder %s43_s28, %s43_s28 }
  0x1b   :  { %p1289_p10 = scmp.ne.s32.totalorder %s43_s28, %s1288_s29  ;;  %p1294_p12 = scmp.lt.s32.totalorder %s1288_s29, %s1288_s29 }
  0x1d   :  { %p1295_p13 = por %p1294_p12, %p1293_p11 }
  0x1f   :  { %p1296_p0 = pnand %p1295_p13, %p1289_p10 }
  0x21   :  { %1299 = shalt.err (!%p1296_p0)
}
  0x22   :  { %s1353_s1 = smov 64   ;;  %s1354_s30 = smov 4  }
  0x23   :  { %48 = dma.hbm_to_vmem [thread:$0]  %s1547_s2, 4096, %s43_s28, [#allocation6], %s1353_s1, %s1353_s1, %s1354_s30  }
  0x24   :  { %s1355_s7 = smov [#allocation8]  }
  0x25   :  { %s55_s8 = sshll.u32 %s1355_s7, 4  ;;  %s56_s8 = int_to_ptr.vmem [resolvable:$true] %s55_s8 }
  0x26   :  { %s1308_s0 = scalar_lea.vmem %s56_s8, 128  ;;  %p1313_p2 = scmp.lt.s32.totalorder %s56_s8, %s56_s8 }
  0x27   :  { %p1309_p1 = scmp.ne.s32.totalorder %s56_s8, %s1308_s0  ;;  %p1314_p3 = scmp.lt.s32.totalorder %s1308_s0, %s1308_s0 }
  0x29   :  { %p1315_p4 = por %p1314_p3, %p1313_p2 }
  0x2b   :  { %p1316_p5 = pnand %p1315_p4, %p1309_p1 }
  0x2d   :  { %1319 = shalt.err (!%p1316_p5)
}
  0x2e   :  { %58 = dma.hbm_to_vmem [thread:$0]  %s1548_s3, 128, %s56_s8, [#allocation9]  }
  0x2f   :  { %1340 = dma.done.wait [#allocation3], 256  }
  0x30   :  { %1341 = vsyncadd [#allocation3], 4294967040 }
  0x31   :  { %1342 = dma.done.wait [#allocation6], 4352  }
  0x32   :  { %1343 = vsyncadd [#allocation6], 4294962944 }
  0x33   :  { %1344 = dma.done.wait [#allocation9], 128  }
  0x34   :  { %1345 = vsyncadd [#allocation9], 4294967168  ;;  %v1356_v0 = vmov 0.0   ;;  %vm1357_vm0 = vmmov 0   ;;  %v1180_v1 = vld [vmem:[#allocation7 + $0x38] sm:$0xff]   ;;  %v1182_v3 = vld [vmem:[#allocation7 + $0x30] sm:$0xff]   ;;  %v79_v51 = vlaneseq }
  0x35   :  { %1062 = vmatprep.subr.bf16.mxu0 %v1356_v0  ;;  %1082 = vmatprep.subr.bf16.mxu1 %v1356_v0  ;;  %v1181_v2 = vld [vmem:[#allocation7 + $0x78] sm:$0xff]   ;;  %v1183_v4 = vld [vmem:[#allocation7 + $0x70] sm:$0xff]   ;;  %v1184_v5 = vld [vmem:[#allocation7 + $0x28] sm:$0xff]   ;;  %v1358_v23 = vmov 65   ;;  %v1359_v24 = vmov 64   ;;  %s1360_s2 = smov 32  }
  0x36   :  { %1078 = vmatprep.mubr.msk.bf16.mxu0 %vm1357_vm0, %v1356_v0  ;;  %1098 = vmatprep.mubr.msk.bf16.mxu1 %vm1357_vm0, %v1356_v0  ;;  %v1185_v6 = vld [vmem:[#allocation7 + $0x68] sm:$0xff]   ;;  %v1186_v7 = vld [vmem:[#allocation7 + $0x20] sm:$0xff]   ;;  %v1188_v9 = vld [vmem:[#allocation7 + $0x18] sm:$0xff]   ;;  %v1457_v52 = vand.u32 127, %v79_v51  ;;  %vm621_vm5 = vcmask 64512   ;;  %s1361_s3 = smov 96  }
  0x37   :  { %1063 = vmatpush3.bf16.msra.mxu0 %v1180_v1  ;;  %1083 = vmatpush3.bf16.msra.mxu1 %v1181_v2  ;;  %v1187_v8 = vld [vmem:[#allocation7 + $0x60] sm:$0xff]   ;;  %v1189_v10 = vld [vmem:[#allocation7 + $0x58] sm:$0xff]   ;;  %v1190_v11 = vld [vmem:[#allocation7 + $0x10] sm:$0xff]   ;;  %s1362_s11 = smov [#allocation10]  }
  0x38   :  { %1064 = vmatprep.subr.bf16.mxu0 %v1356_v0  ;;  %1084 = vmatprep.subr.bf16.mxu1 %v1356_v0  ;;  %v1191_v12 = vld [vmem:[#allocation7 + $0x50] sm:$0xff]   ;;  %v1192_v13 = vld [vmem:[#allocation7 + $0x8] sm:$0xff]   ;;  %v1194_v15 = vld [vmem:[#allocation7] sm:$0xff]   ;;  %vm82_vm1 = vcmp.ge.s32.totalorder %v1457_v52, 32  ;;  %vm83_vm2 = vcmp.lt.s32.totalorder %v1457_v52, 64  ;;  %vm81_vm4 = vcmp.lt.s32.totalorder %v1457_v52, 32 }
  0x39   :  { %v1193_v14 = vld [vmem:[#allocation7 + $0x48] sm:$0xff]   ;;  %v74_v16 = vld [vmem:[#allocation5] sm:$0xff]  ;;  %v75_v17 = vld [vmem:[#allocation5 + $0x8] sm:$0xff]  ;;  %1178 = vset.pattern.permute.xlu1 %v1358_v23  ;;  %1177 = vset.pattern.permute.xlu0 %v1359_v24  ;;  %s966_s12 = sshll.u32 %s1362_s11, 4  ;;  %s967_s12 = int_to_ptr.vmem [resolvable:$true] %s966_s12 }
  0x3a   :  { %v1195_v18 = vld [vmem:[#allocation7 + $0x40] sm:$0xff]   ;;  %v1426_v20 = vld [vmem:[#allocation2 + $0x8] sm:$0xff]  ;;  %v77_v21 = vpack.c.bf16 %v75_v17, %v74_v16  ;;  %v1196_v25 = vld [vmem:[#allocation7 + $0xb8] sm:$0xff]   ;;  %s1320_s13 = scalar_lea.vmem %s967_s12, 256  ;;  %p1325_p7 = scmp.lt.s32.totalorder %s967_s12, %s967_s12 }
  0x3b   :  { %1065 = vmatpush3.bf16.msra.mxu0 %v1182_v3  ;;  %1085 = vmatpush3.bf16.msra.mxu1 %v1183_v4  ;;  %v1424_v19 = vld [vmem:[#allocation2] sm:$0xff]  ;;  %v1197_v26 = vld [vmem:[#allocation7 + $0xb0] sm:$0xff]   ;;  %v1198_v27 = vld [vmem:[#allocation7 + $0xa8] sm:$0xff]   ;;  %p1321_p6 = scmp.ne.s32.totalorder %s967_s12, %s1320_s13  ;;  %p1326_p8 = scmp.lt.s32.totalorder %s1320_s13, %s1320_s13 }
  0x3c   :  { %1066 = vmatprep.subr.bf16.mxu0 %v1356_v0  ;;  %1086 = vmatprep.subr.bf16.mxu1 %v1356_v0  ;;  %v76_v22 = vpack.c.bf16 %v1426_v20, %v1424_v19  ;;  %v1199_v28 = vld [vmem:[#allocation7 + $0xa0] sm:$0xff]   ;;  %v1200_v45 = vld [vmem:[#allocation7 + $0x98] sm:$0xff]   ;;  %v1201_v47 = vld [vmem:[#allocation7 + $0x90] sm:$0xff]  }
  0x3d   :  { %v1202_v49 = vld [vmem:[#allocation7 + $0x88] sm:$0xff]   ;;  %v1203_v50 = vld [vmem:[#allocation7 + $0x80] sm:$0xff]   ;;  %vm1461_vm3 = vmand %vm82_vm1, %vm83_vm2  ;;  %p1327_p9 = por %p1326_p8, %p1325_p7 }
  0x3f   :  { %1067 = vmatpush3.bf16.msra.mxu0 %v1184_v5  ;;  %1087 = vmatpush3.bf16.msra.mxu1 %v1185_v6  ;;  %p1328_p10 = pnand %p1327_p9, %p1321_p6 }
  0x40   :  { %1068 = vmatprep.subr.bf16.mxu0 %v1356_v0  ;;  %1088 = vmatprep.subr.bf16.mxu1 %v1356_v0 }
  0x43   :  { %1069 = vmatpush3.bf16.msra.mxu0 %v1186_v7  ;;  %1089 = vmatpush3.bf16.msra.mxu1 %v1187_v8 }
  0x44   :  { %1070 = vmatprep.subr.bf16.mxu0 %v1356_v0  ;;  %1090 = vmatprep.subr.bf16.mxu1 %v1356_v0 }
  0x47   :  { %1071 = vmatpush3.bf16.msra.mxu0 %v1188_v9  ;;  %1091 = vmatpush3.bf16.msra.mxu1 %v1189_v10 }
  0x48   :  { %1072 = vmatprep.subr.bf16.mxu0 %v1356_v0  ;;  %1092 = vmatprep.subr.bf16.mxu1 %v1356_v0 }
  0x4b   :  { %1073 = vmatpush3.bf16.msra.mxu0 %v1190_v11  ;;  %1093 = vmatpush3.bf16.msra.mxu1 %v1191_v12  ;;  %v1479_v12 = vshrl.u32 %v79_v51, 7 }
  0x4c   :  { %1074 = vmatprep.subr.bf16.mxu0 %v1356_v0  ;;  %1094 = vmatprep.subr.bf16.mxu1 %v1356_v0 }
  0x4d   :  { %v457_v16 = vsub.s32 0, %v1479_v12 }
  0x4f   :  { %1075 = vmatpush3.bf16.msra.mxu0 %v1192_v13  ;;  %1095 = vmatpush3.bf16.msra.mxu1 %v1193_v14  ;;  %v465_v13 = vsub.s32 1, %v1479_v12  ;;  %v473_v14 = vsub.s32 2, %v1479_v12 }
  0x50   :  { %1076 = vmatprep.subr.bf16.mxu0 %v1356_v0  ;;  %1096 = vmatprep.subr.bf16.mxu1 %v1356_v0 }
  0x53   :  { %1077 = vmatpush3.bf16.msra.mxu0 %v1194_v15  ;;  %1097 = vmatpush3.bf16.msra.mxu1 %v1195_v18  ;;  %v1483_v15 = vld [vmem:[#allocation8] sm:$0xff] }
  0x54   :  { %1102 = vmatprep.subr.bf16.mxu0 %v1356_v0  ;;  %1132 = vmatprep.subr.mxu1 %v1356_v0  ;;  %v466_v17 = vrot.slane %v1483_v15, %v465_v13  ;;  %v474_v18 = vrot.slane %v1483_v15, %v473_v14 }
  0x56   :  { %1079 = vmatmul.mubr.bf16.vlgmr.msra.gmra.mxu0 %v77_v21  ;;  %1099 = vmatmul.mubr.bf16.vlgmr.msra.gmra.mxu1 %v76_v22  ;;  %v458_v22 = vrot.slane %v1483_v15, %v457_v16 }
  0x57   :  { %1118 = vmatprep.mubr.msk.bf16.mxu0 %vm1357_vm0, %v1356_v0  ;;  %1134 = vmatprep.mubr.msk.f32.mxu1 %vm1357_vm0, %v1356_v0 }
  0x58   :  { %1103 = vmatpush3.bf16.msra.mxu0 %v1196_v25 }
  0x59   :  { %1104 = vmatprep.subr.bf16.mxu0 %v1356_v0 }
  0x5c   :  { %1105 = vmatpush3.bf16.msra.mxu0 %v1197_v26 }
  0x5d   :  { %1106 = vmatprep.subr.bf16.mxu0 %v1356_v0 }
  0x60   :  { %1107 = vmatpush3.bf16.msra.mxu0 %v1198_v27 }
  0x61   :  { %1108 = vmatprep.subr.bf16.mxu0 %v1356_v0 }
  0x64   :  { %1109 = vmatpush3.bf16.msra.mxu0 %v1199_v28 }
  0x65   :  { %1110 = vmatprep.subr.bf16.mxu0 %v1356_v0 }
  0x68   :  { %1111 = vmatpush3.bf16.msra.mxu0 %v1200_v45 }
  0x69   :  { %1112 = vmatprep.subr.bf16.mxu0 %v1356_v0 }
  0x6c   :  { %1113 = vmatpush3.bf16.msra.mxu0 %v1201_v47 }
  0x6d   :  { %1114 = vmatprep.subr.bf16.mxu0 %v1356_v0 }
  0x70   :  { %1115 = vmatpush3.bf16.msra.mxu0 %v1202_v49 }
  0x71   :  { %1116 = vmatprep.subr.bf16.mxu0 %v1356_v0 }
  0x74   :  { %1117 = vmatpush3.bf16.msra.mxu0 %v1203_v50 }
  0x75   :  { %1122 = vmatprep.subr.mxu0 %v1356_v0 }
 0x116   :  { %v1442_v29 = vpop.f32.mrf.mxu0  ;;  %v1444_v30 = vpop.f32.mrf.mxu1 }
 0x117   :  { %v296_v31 = vadd.f32 %v1444_v30, %v1442_v29  ;;  %v453_v25 = vsel %vm81_vm4, %v1444_v30, 0.0 }
 0x118   :  { %v1080_v32 = vpop.f32.mrf.mxu0  ;;  %v1100_v33 = vpop.f32.mrf.mxu1 }
 0x119   :  { %v996_v34 = vmul.f32 -1.442695, %v296_v31  ;;  %v459_v31 = vadd.f32 %v458_v22, %v453_v25 }
 0x11a   :  { %v186_v35 = vpop.f32.mrf.mxu0  ;;  %v1448_v36 = vpop.f32.mrf.mxu1 }
 0x11b   :  { %1212 = vpow2.f32 %v996_v34  ;;  %v297_v37 = vadd.f32 %v1448_v36, %v186_v35  ;;  %v454_v34 = vsel %vm81_vm4, %v1448_v36, 0.0 }
 0x11c   :  { %v1081_v38 = vpop.f32.mrf.mxu0  ;;  %v1101_v39 = vpop.f32.mrf.mxu1 }
 0x11d   :  { %v997_v40 = vmul.f32 -1.442695, %v297_v37  ;;  %v460_v39 = vadd.f32 %v458_v22, %v454_v34 }
 0x11f   :  { %1214 = vpow2.f32 %v997_v40 }
 0x128   :  { %v1213_v41 = vpop.eup %1212 }
 0x129   :  { %v304_v42 = vadd.f32 1.0, %v1213_v41 }
 0x12b   :  { %1216 = vrcp.f32 %v304_v42 }
 0x12c   :  { %v1215_v43 = vpop.eup %1214 }
 0x12d   :  { %v305_v44 = vadd.f32 1.0, %v1215_v43 }
 0x12f   :  { %1218 = vrcp.f32 %v305_v44 }
 0x138   :  { %v1217_v46 = vpop.eup %1216 }
 0x139   :  { %329 = vperm.xlu1 %1178, %v1217_v46   ;;  %318 = vperm.xlu0 %1177, %v1217_v46  }
 0x13c   :  { %v1219_v48 = vpop.eup %1218 }
 0x13d   :  { %333 = vperm.xlu1 %1178, %v1219_v48   ;;  %323 = vperm.xlu0 %1177, %v1219_v48  }
 0x141   :  { %312 = vrot.lane.b32.xlu1 %v1426_v20, %s1360_s2  ;;  %310 = vrot.lane.b32.xlu0 %v1424_v19, %s1360_s2 }
 0x142   :  { %1179 = vset.pattern.permute.xlu0 %v1358_v23 }
 0x1b4   :  { %v330_v53 = vpop.permute.xlu1 %329  ;;  %v319_v54 = vpop.permute.xlu0 %318 }
 0x1b5   :  { %v336_v58 = vsel %vm1461_vm3, %v330_v53, 0.0  ;;  %v326_v59 = vsel %vm81_vm4, %v319_v54, 0.0 }
 0x1b6   :  { %v338_v3 = vadd.f32 %v336_v58, %v326_v59  ;;  %v1205_v58 = vld [vmem:[#allocation7 + $0xf0] sm:$0xff]   ;;  %v1206_v59 = vld [vmem:[#allocation7 + $0xe8] sm:$0xff]  }
 0x1b8   :  { %v334_v55 = vpop.permute.xlu1 %333  ;;  %v324_v56 = vpop.permute.xlu0 %323 }
 0x1b9   :  { %v337_v60 = vsel %vm1461_vm3, %v334_v55, 0.0  ;;  %v327_v61 = vsel %vm81_vm4, %v324_v56, 0.0  ;;  %v1204_v56 = vld [vmem:[#allocation7 + $0xf8] sm:$0xff]  }
 0x1ba   :  { %v339_v4 = vadd.f32 %v337_v60, %v327_v61  ;;  %v1207_v60 = vld [vmem:[#allocation7 + $0xe0] sm:$0xff]   ;;  %v1208_v61 = vld [vmem:[#allocation7 + $0xd8] sm:$0xff]  }
 0x1bc   :  { %v313_v62 = vpop.permute.xlu1 %312  ;;  %v311_v63 = vpop.permute.xlu0 %310 }
 0x1bd   :  { %v315_v1 = vadd.f32 %v313_v62, %v1426_v20  ;;  %v314_v2 = vadd.f32 %v311_v63, %v1424_v19  ;;  %v1209_v62 = vld [vmem:[#allocation7 + $0xd0] sm:$0xff]   ;;  %v1210_v63 = vld [vmem:[#allocation7 + $0xc8] sm:$0xff]  }
 0x1bf   :  { %v341_v5 = vsub.f32 %v186_v35, %v315_v1  ;;  %v340_v6 = vsub.f32 %v1442_v29, %v314_v2 }
 0x1c1   :  { %v343_v7 = vmul.f32 %v341_v5, %v339_v4  ;;  %v342_v8 = vmul.f32 %v340_v6, %v338_v3 }
 0x1c3   :  { %v345_v9 = vadd.f32 %v343_v7, %v315_v1  ;;  %v344_v10 = vadd.f32 %v342_v8, %v314_v2  ;;  %v1211_v1 = vld [vmem:[#allocation7 + $0xc0] sm:$0xff]  }
 0x1c5   :  { %v346_v11 = vpack.c.bf16 %v345_v9, %v344_v10 }
 0x1c7   :  { %1119 = vmatmul.mubr.bf16.vlgmr.msra.gmra.mxu0 %v346_v11 }
 0x1c8   :  { %1124 = vmatprep.mubr.msk.f32.mxu0 %vm1357_vm0, %v1356_v0 }
 0x287   :  { %v446_v21 = vpop.f32.mrf.mxu0 }
 0x288   :  { %v461_v23 = vsel %vm81_vm4, %v446_v21, 0.0  ;;  %v469_v24 = vsel %vm1461_vm3, %v446_v21, 0.0 }
 0x289   :  { %v467_v26 = vadd.f32 %v466_v17, %v461_v23  ;;  %v475_v27 = vadd.f32 %v474_v18, %v469_v24  ;;  %v1120_v28 = vpop.f32.mrf.mxu0 }
 0x28b   :  { %v449_v29 = vpop.f32.mrf.mxu0  ;;  %1123 = vmatpush3.xpose.msra.mxu0 %v467_v26  ;;  %1133 = vmatpush3.msra.mxu1 %v475_v27 }
 0x28c   :  { %v462_v32 = vsel %vm81_vm4, %v449_v29, 0.0  ;;  %v470_v33 = vsel %vm1461_vm3, %v449_v29, 0.0  ;;  %1127 = vmatprep.subr.mxu0 %v1356_v0  ;;  %1137 = vmatprep.subr.mxu1 %v1356_v0 }
 0x28d   :  { %v468_v35 = vadd.f32 %v466_v17, %v462_v32  ;;  %v476_v37 = vadd.f32 %v474_v18, %v470_v33  ;;  %v1121_v38 = vpop.f32.mrf.mxu0 }
 0x28e   :  { %1125 = vmatmul.mubr.f32.vlgmr.msra.gmra.mxu0 %v459_v31 }
 0x28f   :  { %1128 = vmatpush3.xpose.msra.mxu0 %v468_v35  ;;  %1129 = vmatprep.mubr.msk.f32.mxu0 %vm1357_vm0, %v1356_v0 }
 0x292   :  { %1130 = vmatmul.mubr.f32.vlgmr.msra.gmra.mxu0 %v460_v39 }
 0x34e   :  { %v543_v40 = vpop.f32.mrf.mxu0 }
 0x34f   :  { %v617_v41 = vmul.f32 1.442695, %v543_v40 }
 0x350   :  { %v1126_v42 = vpop.f32.mrf.mxu0 }
 0x351   :  { %1220 = vpow2.f32 %v617_v41 }
 0x352   :  { %v613_v43 = vpop.f32.mrf.mxu0 }
 0x353   :  { %v619_v44 = vmul.f32 1.442695, %v613_v43 }
 0x354   :  { %v1131_v45 = vpop.f32.mrf.mxu0 }
 0x355   :  { %1222 = vpow2.f32 %v619_v44 }
 0x35e   :  { %v1221_v46 = vpop.eup %1220 }
 0x35f   :  { %v622_v47 = vsel %vm621_vm5, %v1221_v46, 0.0 }
 0x360   :  { %623 = vadd.xlane.f32.xlu0 %v622_v47 }
 0x362   :  { %v1223_v48 = vpop.eup %1222 }
 0x363   :  { %v625_v49 = vsel %vm621_vm5, %v1223_v48, 0.0 }
 0x364   :  { %626 = vadd.xlane.f32.xlu1 %v625_v49 }
 0x3e9   :  { %v624_v50 = vpop.xlane.xlu0 %623 }
 0x3ea   :  { %1224 = vrcp.f32 %v624_v50 }
 0x3ed   :  { %v627_v51 = vpop.xlane.xlu1 %626 }
 0x3ee   :  { %1226 = vrcp.f32 %v627_v51 }
 0x3f7   :  { %v1225_v53 = vpop.eup %1224 }
 0x3f8   :  { %v630_v54 = vmul.f32 %v1225_v53, %v1221_v46 }
 0x3fa   :  { %1135 = vmatmul.mubr.msk.f32.vlgmr.msra.gmra.mxu1 %vm621_vm5, %v630_v54 }
 0x3fb   :  { %v1227_v55 = vpop.eup %1226  ;;  %1138 = vmatpush3.msra.mxu1 %v476_v37  ;;  %1139 = vmatprep.mubr.msk.f32.mxu1 %vm1357_vm0, %v1356_v0 }
 0x3fc   :  { %v631_v57 = vmul.f32 %v1227_v55, %v1223_v48  ;;  %1142 = vmatprep.subr.bf16.mxu1 %v1356_v0  ;;  %v955_v55 = vsub.s32 6, %v1479_v12 }
 0x3fe   :  { %1140 = vmatmul.mubr.msk.f32.vlgmr.msra.gmra.mxu1 %vm621_vm5, %v631_v57 }
 0x3ff   :  { %1143 = vmatpush3.bf16.msra.mxu1 %v1204_v56  ;;  %1158 = vmatprep.mubr.msk.bf16.mxu1 %vm1357_vm0, %v1356_v0 }
 0x400   :  { %1144 = vmatprep.subr.bf16.mxu1 %v1356_v0 }
 0x403   :  { %1145 = vmatpush3.bf16.msra.mxu1 %v1205_v58 }
 0x404   :  { %1146 = vmatprep.subr.bf16.mxu1 %v1356_v0 }
 0x407   :  { %1147 = vmatpush3.bf16.msra.mxu1 %v1206_v59 }
 0x408   :  { %1148 = vmatprep.subr.bf16.mxu1 %v1356_v0 }
 0x40b   :  { %1149 = vmatpush3.bf16.msra.mxu1 %v1207_v60  ;;  %v956_v60 = vrot.slane %v1483_v15, %v955_v55 }
 0x40c   :  { %1150 = vmatprep.subr.bf16.mxu1 %v1356_v0 }
 0x40f   :  { %1151 = vmatpush3.bf16.msra.mxu1 %v1208_v61 }
 0x410   :  { %1152 = vmatprep.subr.bf16.mxu1 %v1356_v0 }
 0x413   :  { %1153 = vmatpush3.bf16.msra.mxu1 %v1209_v62 }
 0x414   :  { %1154 = vmatprep.subr.bf16.mxu1 %v1356_v0 }
 0x417   :  { %1155 = vmatpush3.bf16.msra.mxu1 %v1210_v63 }
 0x418   :  { %1156 = vmatprep.subr.bf16.mxu1 %v1356_v0  ;;  %v901_v0 = vsub.s32 4, %v1479_v12 }
 0x41a   :  { %v902_v14 = vrot.slane %v1483_v15, %v901_v0 }
 0x41b   :  { %1157 = vmatpush3.bf16.msra.mxu1 %v1211_v1 }
 0x4ba   :  { %v701_v2 = vpop.f32.mrf.mxu1 }
 0x4bc   :  { %v1136_v3 = vpop.f32.mrf.mxu1 }
 0x4be   :  { %v774_v4 = vpop.f32.mrf.mxu1 }
 0x4bf   :  { %v778_v5 = vpack.c.bf16 %v774_v4, %v701_v2 }
 0x4c0   :  { %v1141_v6 = vpop.f32.mrf.mxu1 }
 0x4c1   :  { %1159 = vmatmul.mubr.bf16.vlgmr.msra.gmra.mxu1 %v778_v5 }
 0x581   :  { %v878_v7 = vpop.f32.mrf.mxu1 }
 0x582   :  { %v893_v8 = vadd.f32 %v878_v7, %v1444_v30  ;;  %v885_v28 = vsel %vm81_vm4, %v878_v7, 0.0 }
 0x583   :  { %v1160_v9 = vpop.f32.mrf.mxu1 }
 0x584   :  { %895 = vrot.lane.b32.xlu0 %v893_v8, %s1361_s3 }
 0x585   :  { %v881_v10 = vpop.f32.mrf.mxu1 }
 0x586   :  { %v894_v11 = vadd.f32 %v881_v10, %v1448_v36  ;;  %v889_v36 = vsub.s32 3, %v1479_v12  ;;  %v886_v32 = vsel %vm81_vm4, %v881_v10, 0.0 }
 0x587   :  { %v1161_v13 = vpop.f32.mrf.mxu1 }
 0x588   :  { %897 = vrot.lane.b32.xlu1 %v894_v11, %s1361_s3  ;;  %v890_v27 = vrot.slane %v1483_v15, %v889_v36 }
 0x58a   :  { %v891_v29 = vadd.f32 %v890_v27, %v885_v28  ;;  %v892_v34 = vadd.f32 %v890_v27, %v886_v32 }
 0x5f6   :  { %v896_v16 = vpop.permute.xlu0 %895 }
 0x5f7   :  { %v903_v17 = vadd.f32 %v902_v14, %v896_v16 }
 0x5f9   :  { %v1016_v18 = vmul.f32 -1.442695, %v903_v17 }
 0x5fa   :  { %v898_v21 = vpop.permute.xlu1 %897 }
 0x5fb   :  { %1228 = vpow2.f32 %v1016_v18  ;;  %v904_v22 = vadd.f32 %v902_v14, %v898_v21 }
 0x5fd   :  { %v1017_v23 = vmul.f32 -1.442695, %v904_v22 }
 0x5ff   :  { %1230 = vpow2.f32 %v1017_v23 }
 0x608   :  { %v1229_v30 = vpop.eup %1228 }
 0x609   :  { %v911_v24 = vadd.f32 1.0, %v1229_v30 }
 0x60b   :  { %1232 = vrcp.f32 %v911_v24 }
 0x60c   :  { %v1231_v25 = vpop.eup %1230 }
 0x60d   :  { %v912_v26 = vadd.f32 1.0, %v1231_v25 }
 0x60f   :  { %1234 = vrcp.f32 %v912_v26 }
 0x618   :  { %v1233_v31 = vpop.eup %1232 }
 0x619   :  { %v917_v33 = vmul.f32 %v1233_v31, %v891_v29 }
 0x61b   :  { %v919_v35 = vadd.f32 %v917_v33, %v1424_v19 }
 0x61c   :  { %v1235_v37 = vpop.eup %1234 }
 0x61d   :  { %921 = vadd.xlane.f32.xlu0 %v919_v35  ;;  %v918_v38 = vmul.f32 %v1235_v37, %v892_v34  ;;  %v927_v39 = vmul.f32 %v919_v35, %v919_v35 }
 0x61f   :  { %v920_v40 = vadd.f32 %v918_v38, %v1426_v20  ;;  %v949_v20 = vsub.s32 5, %v1479_v12 }
 0x621   :  { %929 = vadd.xlane.f32.xlu0 %v927_v39  ;;  %923 = vadd.xlane.f32.xlu1 %v920_v40  ;;  %v928_v41 = vmul.f32 %v920_v40, %v920_v40  ;;  %v950_v57 = vrot.slane %v1483_v15, %v949_v20 }
 0x625   :  { %931 = vadd.xlane.f32.xlu0 %v928_v41 }
 0x6a6   :  { %v922_v42 = vpop.xlane.xlu0 %921 }
 0x6a7   :  { %v925_v43 = vmul.f32 0.03125, %v922_v42 }
 0x6a9   :  { %v935_v52 = vmul.f32 %v925_v43, %v925_v43  ;;  %v939_v56 = vsub.f32 %v919_v35, %v925_v43 }
 0x6aa   :  { %v930_v44 = vpop.xlane.xlu0 %929  ;;  %v924_v45 = vpop.xlane.xlu1 %923 }
 0x6ab   :  { %v933_v46 = vmul.f32 0.03125, %v930_v44  ;;  %v926_v47 = vmul.f32 0.03125, %v924_v45 }
 0x6ad   :  { %v937_v48 = vsub.f32 %v933_v46, %v935_v52  ;;  %v936_v50 = vmul.f32 %v926_v47, %v926_v47  ;;  %v940_v61 = vsub.f32 %v920_v40, %v926_v47 }
 0x6ae   :  { %v932_v49 = vpop.xlane.xlu0 %931 }
 0x6af   :  { %v941_v19 = vadd.f32 1e-05, %v937_v48  ;;  %v934_v51 = vmul.f32 0.03125, %v932_v49 }
 0x6b1   :  { %1236 = vrsqrt.f32 %v941_v19  ;;  %v938_v53 = vsub.f32 %v934_v51, %v936_v50 }
 0x6b3   :  { %v942_v54 = vadd.f32 1e-05, %v938_v53 }
 0x6b5   :  { %1238 = vrsqrt.f32 %v942_v54 }
 0x6be   :  { %v1237_v58 = vpop.eup %1236 }
 0x6bf   :  { %v945_v59 = vmul.f32 %v1237_v58, %v939_v56 }
 0x6c1   :  { %v951_v62 = vmul.f32 %v950_v57, %v945_v59 }
 0x6c2   :  { %v1239_v63 = vpop.eup %1238 }
 0x6c3   :  { %v946_v1 = vmul.f32 %v1239_v63, %v940_v61  ;;  %v957_v2 = vadd.f32 %v956_v60, %v951_v62 }
 0x6c5   :  { %v952_v3 = vmul.f32 %v950_v57, %v946_v1  ;;  %959 = vst [vmem:[#allocation10] sm:$0xff] %v957_v2 }
 0x6c7   :  { %v958_v4 = vadd.f32 %v956_v60, %v952_v3 }
 0x6c9   :  { %960 = vst [vmem:[#allocation10 + $0x8] sm:$0xff] %v958_v4 }
 0x6ca   :  { %1331 = shalt.err (!%p1328_p10)
}
 0x6cb   :  { %972 = dma.vmem_to_hbm [thread:$0]  %s967_s12, 256, %s1549_s4, [#allocation4], %s1350_s20, %s1350_s20, %s1351_s21  }
 0x6cc   :  { %1346 = dma.done.wait [#allocation4], 256  }
 0x6cd   :  { %1347 = vsyncadd [#allocation4], 4294967040 }
 0x6ce   :  { %976 = vsyncpa [#allocation3], 1 }
 0x6cf   :  { %977 = vsyncpa [#allocation6], 1 }
 0x6d0   :  { %978 = vsyncpa [#allocation9], 1 }
 0x6d1   :  { %979 = vsyncpa [#allocation4], 1 }

</bundles_post_ra>
